<compile_context>
chip_gen: v5e
topology: v5e:2x2
jax: 0.10.0
libtpu: 0.0.40
codegen_flags: <defaults>
</compile_context>

<pallas_src>
import functools
import math

import jax
import jax.numpy as jnp
from jax.experimental import pallas as pl
from jax.experimental.pallas import tpu as pltpu


def _round_up(x: int, m: int) -> int:
    return (x + m - 1) // m * m


def _epilogue(acc_f32, bias_f32, *, scale, lr_mul, activation):
    out = acc_f32 * scale + bias_f32 * lr_mul
    if activation is not None:
        # fused_leaky_relu: leaky_relu(. + b, 0.2) * sqrt(2)
        out = jnp.where(out >= 0.0, out, 0.2 * out) * math.sqrt(2.0)
    return out


def _equal_linear_kernel_multi_k(x_ref, w_ref, b_ref, o_ref, acc_ref, *,
                                 scale, lr_mul, activation):
    # x_ref: (tm, tk), w_ref: (tk, tn), b_ref: (1, tn), o_ref: (tm, tn)
    k = pl.program_id(2)

    @pl.when(k == 0)
    def _():
        acc_ref[...] = jnp.zeros_like(acc_ref)

    # Native-dtype operands into the MXU, f32 accumulation.
    acc_ref[...] += jnp.dot(x_ref[...], w_ref[...],
                            preferred_element_type=jnp.float32)

    @pl.when(k == pl.num_programs(2) - 1)
    def _():
        out = _epilogue(acc_ref[...], b_ref[...].astype(jnp.float32),
                        scale=scale, lr_mul=lr_mul, activation=activation)
        o_ref[...] = out.astype(o_ref.dtype)


def _equal_linear_kernel_single_k(x_ref, w_ref, b_ref, o_ref, *,
                                  scale, lr_mul, activation):
    # Whole contraction in one MXU pass; no scratch accumulator needed.
    acc = jnp.dot(x_ref[...], w_ref[...], preferred_element_type=jnp.float32)
    out = _epilogue(acc, b_ref[...].astype(jnp.float32),
                    scale=scale, lr_mul=lr_mul, activation=activation)
    o_ref[...] = out.astype(o_ref.dtype)


def equal_linear(x, weight, bias=None, *, lr_mul=1.0, activation=None,
                 tm_target=256, tn_target=256, tk_target=512):
    """EqualLinear forward.

    x: (B, in_dim), weight: (out_dim, in_dim) (PyTorch convention),
    bias: (out_dim,) or None. Returns (B, out_dim) in x.dtype.
    """
    batch, in_dim = x.shape
    out_dim = weight.shape[0]
    scale = (1.0 / math.sqrt(in_dim)) * lr_mul

    if bias is None:
        bias = jnp.zeros((out_dim,), dtype=x.dtype)

    # Tile sizes: sublane-multiple on M, lane-multiple on N/K; clamp for small
    # problems. These tiles stay well under a 32 MiB VMEM budget (v7x-safe).
    tm = min(tm_target, _round_up(batch, 8))
    tn = min(tn_target, _round_up(out_dim, 128))
    tk = min(tk_target, _round_up(in_dim, 128))

    # Pad to full tiles so every block is dense / unmasked.
    M = _round_up(batch, tm)
    N = _round_up(out_dim, tn)
    K = _round_up(in_dim, tk)

    x_p = x
    if (M, K) != (batch, in_dim):
        x_p = jnp.pad(x, ((0, M - batch), (0, K - in_dim)))

    # One-time K-major weight layout: (in_dim, out_dim), padded.
    w_t = weight.T
    if (K, N) != (in_dim, out_dim):
        w_t = jnp.pad(w_t, ((0, K - in_dim), (0, N - out_dim)))

    b_p = bias
    if N != out_dim:
        b_p = jnp.pad(bias, (0, N - out_dim))
    b2d = b_p.reshape(1, N)

    elem = x.dtype.itemsize
    cost = pl.CostEstimate(
        flops=2 * batch * in_dim * out_dim,
        transcendentals=0,
        bytes_accessed=(batch * in_dim * elem
                        + out_dim * in_dim * weight.dtype.itemsize
                        + out_dim * bias.dtype.itemsize
                        + batch * out_dim * elem),
    )

    n_k_steps = K // tk

    if n_k_steps == 1:
        # Fast path: whole reduction fits one tile -> 2-D grid, no scratch,
        # epilogue fused into the single MXU pass.
        kernel = functools.partial(_equal_linear_kernel_single_k, scale=scale,
                                   lr_mul=lr_mul, activation=activation)
        out_padded = pl.pallas_call(
            kernel,
            out_shape=jax.ShapeDtypeStruct((M, N), x.dtype),
            grid_spec=pltpu.PrefetchScalarGridSpec(
                num_scalar_prefetch=0,
                grid=(M // tm, N // tn),
                in_specs=[
                    pl.BlockSpec((tm, K), lambda i, j: (i, 0)),    # x
                    pl.BlockSpec((K, tn), lambda i, j: (0, j)),    # W^T
                    pl.BlockSpec((1, tn), lambda i, j: (0, j)),    # bias
                ],
                out_specs=pl.BlockSpec((tm, tn), lambda i, j: (i, j)),
            ),
            compiler_params=pltpu.CompilerParams(
                dimension_semantics=("parallel", "parallel"),
                vmem_limit_bytes=32 * 1024 * 1024,
            ),
            cost_estimate=cost,
        )(x_p, w_t, b2d)
    else:
        kernel = functools.partial(_equal_linear_kernel_multi_k, scale=scale,
                                   lr_mul=lr_mul, activation=activation)
        out_padded = pl.pallas_call(
            kernel,
            out_shape=jax.ShapeDtypeStruct((M, N), x.dtype),
            grid_spec=pltpu.PrefetchScalarGridSpec(
                num_scalar_prefetch=0,
                grid=(M // tm, N // tn, n_k_steps),
                in_specs=[
                    pl.BlockSpec((tm, tk), lambda i, j, k: (i, k)),   # x
                    pl.BlockSpec((tk, tn), lambda i, j, k: (k, j)),   # W^T
                    pl.BlockSpec((1, tn), lambda i, j, k: (0, j)),    # bias
                ],
                out_specs=pl.BlockSpec((tm, tn), lambda i, j, k: (i, j)),
                scratch_shapes=[pltpu.VMEM((tm, tn), jnp.float32)],
            ),
            compiler_params=pltpu.CompilerParams(
                dimension_semantics=("parallel", "parallel", "arbitrary"),
                vmem_limit_bytes=32 * 1024 * 1024,
            ),
            cost_estimate=cost,
        )(x_p, w_t, b2d)

    return out_padded[:batch, :out_dim]


def _reference(x, weight, bias, *, lr_mul=1.0, activation=None):
    in_dim = x.shape[-1]
    scale = (1.0 / math.sqrt(in_dim)) * lr_mul
    out = x @ (weight * scale).T + bias * lr_mul
    if activation is not None:
        out = jnp.where(out >= 0.0, out, 0.2 * out) * math.sqrt(2.0)
    return out


if __name__ == "__main__":
    key = jax.random.PRNGKey(0)
    k_x, k_w, k_x2, k_w2 = jax.random.split(key, 4)

    # --- Small shapes (single-K fast path) ---
    batch, in_dim, out_dim = 8, 32, 64
    lr_mul = 0.5
    bias_init = 0.1

    # Deterministic parameter init mirroring the module's __init__:
    #   weight = randn(out_dim, in_dim) / lr_mul ; bias = full(out_dim, bias_init)
    weight = jax.random.normal(k_w, (out_dim, in_dim), dtype=jnp.float32) / lr_mul
    bias = jnp.full((out_dim,), bias_init, dtype=jnp.float32)
    x = jax.random.normal(k_x, (batch, in_dim), dtype=jnp.float32)

    # No-activation path
    out_plain = equal_linear(x, weight, bias, lr_mul=lr_mul, activation=None)
    jax.block_until_ready(out_plain)
    ref_plain = _reference(x, weight, bias, lr_mul=lr_mul, activation=None)

    # Fused leaky-relu activation path
    out_act = equal_linear(x, weight, bias, lr_mul=lr_mul, activation="fused_lrelu")
    jax.block_until_ready(out_act)
    ref_act = _reference(x, weight, bias, lr_mul=lr_mul, activation="fused_lrelu")

    assert out_plain.shape == (batch, out_dim)
    assert out_act.shape == (batch, out_dim)
    assert jnp.allclose(out_plain, ref_plain, atol=1e-4, rtol=1e-4)
    assert jnp.allclose(out_act, ref_act, atol=1e-4, rtol=1e-4)

    # --- Larger shapes (multi-K accumulator path) ---
    b2, d_in2, d_out2 = 16, 1024, 256
    w2 = jax.random.normal(k_w2, (d_out2, d_in2), dtype=jnp.float32)
    b2d = jnp.zeros((d_out2,), dtype=jnp.float32)
    x2 = jax.random.normal(k_x2, (b2, d_in2), dtype=jnp.float32)

    out2 = equal_linear(x2, w2, b2d, lr_mul=1.0, activation="fused_lrelu",
                        tk_target=512)
    jax.block_until_ready(out2)
    ref2 = _reference(x2, w2, b2d, lr_mul=1.0, activation="fused_lrelu")
    assert out2.shape == (b2, d_out2)
    assert jnp.allclose(out2, ref2, atol=1e-3, rtol=1e-3)

    print("KERNEL_OK")
</pallas_src>

<mosaic_0001>
module attributes {stable_mosaic.version = 11 : i64} {
  func.func @_equal_linear_kernel_single_k(%arg0: i32, %arg1: i32, %arg2: memref<8x128xf32, #tpu.memory_space<vmem>>, %arg3: memref<128x128xf32, #tpu.memory_space<vmem>>, %arg4: memref<1x128xf32, #tpu.memory_space<vmem>>, %arg5: memref<8x128xf32, #tpu.memory_space<vmem>>) attributes {dimension_semantics = [#tpu.dimension_semantics<parallel>, #tpu.dimension_semantics<parallel>], iteration_bounds = array<i64: 1, 1>, scalar_prefetch = 0 : i64, scratch_operands = 0 : i64, tpu.core_type = #tpu.core_type<tc>, window_params = [{transform_indices = @transform_0, window_bounds = array<i64: 8, 128>}, {transform_indices = @transform_1, window_bounds = array<i64: 128, 128>}, {transform_indices = @transform_2, window_bounds = array<i64: 1, 128>}, {transform_indices = @transform_3, window_bounds = array<i64: 8, 128>}]} {
    %c0 = arith.constant 0 : index
    %c0_0 = arith.constant 0 : index
    %0 = vector.load %arg2[%c0, %c0_0] : memref<8x128xf32, #tpu.memory_space<vmem>>, vector<8x128xf32>
    %c0_1 = arith.constant 0 : index
    %c0_2 = arith.constant 0 : index
    %1 = vector.load %arg3[%c0_1, %c0_2] : memref<128x128xf32, #tpu.memory_space<vmem>>, vector<128x128xf32>
    %cst = arith.constant dense<0.000000e+00> : vector<8x128xf32>
    %2 = tpu.matmul %0, %1, %cst {dimension_numbers = #tpu.dot_dimension_numbers<[1], [0], [0], [1], [0, 0, 1, 1], [], []>} : vector<8x128xf32>, vector<128x128xf32>, vector<8x128xf32> -> vector<8x128xf32>
    %c0_3 = arith.constant 0 : index
    %c0_4 = arith.constant 0 : index
    %3 = vector.load %arg4[%c0_3, %c0_4] : memref<1x128xf32, #tpu.memory_space<vmem>>, vector<1x128xf32>
    %cst_5 = arith.constant 0.0883883461 : f32
    %4 = vector.broadcast %cst_5 : f32 to vector<8x128xf32>
    %5 = arith.mulf %2, %4 : vector<8x128xf32>
    %cst_6 = arith.constant 5.000000e-01 : f32
    %6 = vector.broadcast %cst_6 : f32 to vector<1x128xf32>
    %7 = arith.mulf %3, %6 : vector<1x128xf32>
    %8 = vector.broadcast %7 : vector<1x128xf32> to vector<8x128xf32>
    %9 = arith.addf %5, %8 : vector<8x128xf32>
    %c0_7 = arith.constant 0 : index
    %c0_8 = arith.constant 0 : index
    %10 = vector.load %arg5[%c0_7, %c0_8] : memref<8x128xf32, #tpu.memory_space<vmem>>, vector<8x128xf32>
    tpu.vector_store %arg5[%c0_7, %c0_8], %9 {strides = array<i32>} : memref<8x128xf32, #tpu.memory_space<vmem>>, vector<8x128xf32>,
    return
  }
  func.func @transform_0(%arg0: i32, %arg1: i32) -> (i32, i32) {
    %c0_i32 = arith.constant 0 : i32
    %c0_i32_0 = arith.constant 0 : i32
    return %arg0, %c0_i32 : i32, i32
  }
  func.func @transform_1(%arg0: i32, %arg1: i32) -> (i32, i32) {
    %c0_i32 = arith.constant 0 : i32
    %c0_i32_0 = arith.constant 0 : i32
    return %c0_i32, %arg1 : i32, i32
  }
  func.func @transform_2(%arg0: i32, %arg1: i32) -> (i32, i32) {
    %c0_i32 = arith.constant 0 : i32
    %c0_i32_0 = arith.constant 0 : i32
    return %c0_i32, %arg1 : i32, i32
  }
  func.func @transform_3(%arg0: i32, %arg1: i32) -> (i32, i32) {
    %c0_i32 = arith.constant 0 : i32
    return %arg0, %arg1 : i32, i32
  }
}

</mosaic_0001>

<bundles_post_ra>
// kernel: tpu_custom_call.1
= control target key start
LH: loop header
LB: loop body
LE: loop exit
PB: predicated region body
PF: predicated region fallthrough
CT: control target
= control target key end

     0   :  { %8 = vsyncpa [#allocation3], 0  ;;  %s228_s0 = inlined_call_operand.hbm [shape: f32[8,128], index: 0, kind: input, shape index: {}]   ;;  %s229_s1 = inlined_call_operand.hbm [shape: f32[128,128], index: 1, kind: input, shape index: {}]   ;;  %s230_s2 = inlined_call_operand.vmem [shape: f32[1,128], index: 2, kind: input, shape index: {}]   ;;  %s231_s3 = inlined_call_operand.hbm [shape: f32[8,128], index: 3, kind: output, shape index: {}]  }
   0x1   :  { %9 = vsyncpa [#allocation6], 0 }
   0x2   :  { %10 = vsyncpa [#allocation4], 0  ;;  %s16_s14 = sshll.u32 %s228_s0, 4  ;;  %s191_s15 = smov [#allocation2]   ;;  %s17_s14 = int_to_ptr.hbm [resolvable:$true] %s16_s14 }
   0x3   :  { %s18_s16 = sshll.u32 %s191_s15, 4  ;;  %s26_s19 = sshll.u32 %s229_s1, 4  ;;  %s19_s16 = int_to_ptr.vmem [resolvable:$true] %s18_s16  ;;  %s27_s19 = int_to_ptr.hbm [resolvable:$true] %s26_s19 }
   0x4   :  { %21 = dma.hbm_to_vmem [thread:$0]  %s17_s14, 128, %s19_s16, [#allocation3]  }
   0x5   :  { %s192_s20 = smov [#allocation5]   ;;  %s193_s22 = smov 128  }
   0x6   :  { %s28_s21 = sshll.u32 %s192_s20, 4  ;;  %s194_s23 = smov 8   ;;  %s29_s21 = int_to_ptr.vmem [resolvable:$true] %s28_s21 }
   0x7   :  { %34 = dma.hbm_to_vmem [thread:$0]  %s27_s19, 2048, %s29_s21, [#allocation6], %s193_s22, %s193_s22, %s194_s23  }
   0x8   :  { %185 = dma.done.wait [#allocation3], 128  }
   0x9   :  { %186 = vsyncadd [#allocation3], 4294967168 }
   0xa   :  { %187 = dma.done.wait [#allocation6], 2048  }
   0xb   :  { %188 = vsyncadd [#allocation6], 4294965248  ;;  %v61_v0 = vld [vmem:[#allocation5 + $0x78] sm:$0xff]  ;;  %v60_v1 = vld [vmem:[#allocation5 + $0x70] sm:$0xff]  ;;  %s195_s24 = smov [#allocation7]   ;;  %s97_s28 = sshll.u32 %s231_s3, 4  ;;  %s98_s28 = int_to_ptr.hbm [resolvable:$true] %s97_s28 }
   0xc   :  { %62 = vmatpush.msra.mxu0 %v61_v0  ;;  %v59_v2 = vld [vmem:[#allocation5 + $0x68] sm:$0xff]  ;;  %v58_v3 = vld [vmem:[#allocation5 + $0x60] sm:$0xff]  ;;  %v57_v4 = vld [vmem:[#allocation5 + $0x58] sm:$0xff]  ;;  %s95_s25 = sshll.u32 %s195_s24, 4  ;;  %s96_s25 = int_to_ptr.vmem [resolvable:$true] %s95_s25 }
   0xd   :  { %v56_v5 = vld [vmem:[#allocation5 + $0x50] sm:$0xff]  ;;  %v55_v6 = vld [vmem:[#allocation5 + $0x48] sm:$0xff]  ;;  %v54_v7 = vld [vmem:[#allocation5 + $0x40] sm:$0xff] }
   0xe   :  { %63 = vmatpush.msra.mxu0 %v60_v1  ;;  %v53_v8 = vld [vmem:[#allocation5 + $0x38] sm:$0xff]  ;;  %v52_v9 = vld [vmem:[#allocation5 + $0x30] sm:$0xff]  ;;  %v51_v10 = vld [vmem:[#allocation5 + $0x28] sm:$0xff] }
   0xf   :  { %v50_v11 = vld [vmem:[#allocation5 + $0x20] sm:$0xff]  ;;  %v49_v12 = vld [vmem:[#allocation5 + $0x18] sm:$0xff]  ;;  %v48_v13 = vld [vmem:[#allocation5 + $0x10] sm:$0xff] }
  0x10   :  { %64 = vmatpush.msra.mxu0 %v59_v2  ;;  %v47_v14 = vld [vmem:[#allocation5 + $0x8] sm:$0xff]  ;;  %v46_v15 = vld [vmem:[#allocation5] sm:$0xff]  ;;  %v45_v16 = vld [vmem:[#allocation2] sm:$0xff] }
  0x11   :  { %v82_v17 = vld [vmem:[%s230_s2] sm:$0x1] }
  0x12   :  { %65 = vmatpush.msra.mxu0 %v58_v3  ;;  %v84_v18 = vmul.f32 0.5, %v82_v17 }
  0x14   :  { %66 = vmatpush.msra.mxu0 %v57_v4  ;;  %v86_v19 = vperm.slane %v84_v18, 0 }
  0x16   :  { %67 = vmatpush.msra.mxu0 %v56_v5 }
  0x18   :  { %68 = vmatpush.msra.mxu0 %v55_v6 }
  0x1a   :  { %69 = vmatpush.msra.mxu0 %v54_v7 }
  0x1c   :  { %70 = vmatpush.msra.mxu0 %v53_v8 }
  0x1e   :  { %71 = vmatpush.msra.mxu0 %v52_v9 }
  0x20   :  { %72 = vmatpush.msra.mxu0 %v51_v10 }
  0x22   :  { %73 = vmatpush.msra.mxu0 %v50_v11 }
  0x24   :  { %74 = vmatpush.msra.mxu0 %v49_v12 }
  0x26   :  { %75 = vmatpush.msra.mxu0 %v48_v13 }
  0x28   :  { %76 = vmatpush.msra.mxu0 %v47_v14 }
  0x2a   :  { %77 = vmatpush.msra.mxu0 %v46_v15 }
  0x2b   :  { %78 = vmatmul.f32.vlgmr.msra.gmra.mxu0 %v45_v16 }
  0xa8   :  { %v79_v20 = vpop.f32.mrf.mxu0 }
  0xa9   :  { %v83_v21 = vmul.f32 0.088388346, %v79_v20 }
  0xab   :  { %v88_v22 = vadd.f32 %v86_v19, %v83_v21 }
  0xad   :  { %89 = vst [vmem:[#allocation7] sm:$0xff] %v88_v22 }
  0xae   :  { %100 = dma.vmem_to_hbm [thread:$0]  %s96_s25, 128, %s98_s28, [#allocation4]  }
  0xaf   :  { %189 = dma.done.wait [#allocation4], 128  }
  0xb0   :  { %190 = vsyncadd [#allocation4], 4294967168 }
  0xb1   :  { %105 = vsyncpa [#allocation3], 1 }
  0xb2   :  { %106 = vsyncpa [#allocation6], 1 }
  0xb3   :  { %107 = vsyncpa [#allocation4], 1 }

</bundles_post_ra>
